<compile_context>
chip_gen: v7x
topology: tpu7x:2x2x1
jax: 0.10.0
libtpu: 0.0.40
codegen_flags: <defaults>
</compile_context>

<pallas_src>
import functools

import jax
import jax.numpy as jnp
from jax.experimental import pallas as pl
from jax.experimental.pallas import tpu as pltpu

_LANES = 128            # TPU lane width
_SUBLANES = 8           # f32 sublanes per vreg
_MAX_LANE_TILE = 32768  # (8, 32768) f32 = 1 MiB per stream per grid step


def _tile_partials(p_ref, s_ref, *, lane_tile, chunk, m_block, m_total,
                   mask_tail):
    """Reduce one (8, lane_tile) tile to (8, 128) partial sums (num, den).

    Processes the tile in static `chunk`-lane slices so the working set is a
    few vregs (no full-tile intermediates).  `m_block` is the *intended*
    (unclamped) lane-tile index along M; when `mask_tail` is set, columns at
    or beyond `m_total` are excluded via a select (NaN-safe for garbage data
    in partially/fully out-of-bounds blocks).
    """
    one = jnp.asarray(1, dtype=s_ref.dtype)
    if mask_tail:
        col = (m_block * lane_tile
               + jax.lax.broadcasted_iota(jnp.int32, (_SUBLANES, chunk), 1))
    acc_n = jnp.zeros((_SUBLANES, chunk), jnp.float32)
    acc_d = jnp.zeros((_SUBLANES, chunk), jnp.float32)
    for j in range(lane_tile // chunk):
        sl = slice(j * chunk, (j + 1) * chunk)
        s = s_ref[:, sl]
        p = jnp.clip(p_ref[:, sl].astype(jnp.float32), 0.0, 1.0)
        m = s != one
        if mask_tail:
            m = m & (col < (m_total - j * chunk))
        sf = s.astype(jnp.float32)
        acc_n = acc_n + jnp.where(m, p * sf, 0.0)
        acc_d = acc_d + jnp.where(m, p * p, 0.0)
    # Fold the chunk-wide accumulators down to a single (8, 128) block
    # (static, 128-aligned slices -> plain VALU adds, no relayout).
    pn = acc_n[:, 0:_LANES]
    pd = acc_d[:, 0:_LANES]
    for j in range(1, chunk // _LANES):
        sl = slice(j * _LANES, (j + 1) * _LANES)
        pn = pn + acc_n[:, sl]
        pd = pd + acc_d[:, sl]
    return pn, pd


def _reduce_resident_kernel(p_ref, s_ref, num_ref, den_ref, *,
                            lane_tile, chunk, m_total, n_split, nt_split,
                            mask_tail):
    """Phase 1, per-batch source: accumulate in the resident output block."""
    t = pl.program_id(1)
    if n_split == 1:
        m_block = t
    else:
        v = pl.program_id(0)
        m_block = (v % n_split) * nt_split + t
    pn, pd = _tile_partials(p_ref, s_ref, lane_tile=lane_tile, chunk=chunk,
                            m_block=m_block, m_total=m_total,
                            mask_tail=mask_tail)

    @pl.when(t == 0)
    def _init():
        num_ref[...] = pn
        den_ref[...] = pd

    @pl.when(t > 0)
    def _accum():
        num_ref[...] = num_ref[...] + pn
        den_ref[...] = den_ref[...] + pd


def _reduce_shared_kernel(p_ref, s_ref, num_ref, den_ref,
                          num_acc_ref, den_acc_ref, *,
                          lane_tile, chunk, m_total, mask_tail):
    """Phase 1, shared source (tile-outer / batch-inner grid ordering)."""
    t = pl.program_id(0)
    b = pl.program_id(1)
    pn, pd = _tile_partials(p_ref, s_ref, lane_tile=lane_tile, chunk=chunk,
                            m_block=t, m_total=m_total, mask_tail=mask_tail)

    @pl.when(t == 0)
    def _init():
        num_acc_ref[b] = pn
        den_acc_ref[b] = pd

    @pl.when(t > 0)
    def _accum():
        num_acc_ref[b] = num_acc_ref[b] + pn
        den_acc_ref[b] = den_acc_ref[b] + pd

    # Emit the running partial every step: the (b,0,0) output block is
    # written back each step (its index changes), so make sure every
    # writeback holds valid data; the last one (t == nt-1) is the full sum.
    num_ref[...] = num_acc_ref[b]
    den_ref[...] = den_acc_ref[b]


def _scale_kernel(scale_ref, p_ref, o_ref):
    """Phase 2: out = scale[b] * clip(predict, 0, 1), lane-dense stores."""
    scale = scale_ref[pl.program_id(0)]          # scalar from SMEM
    p = jnp.clip(p_ref[...].astype(jnp.float32), 0.0, 1.0)
    o_ref[...] = (scale * p).astype(o_ref.dtype)


def eld_illuminance_correct(predict, source):
    """predict: (B, C, H, W); source: (B, C, H, W) or (1, C, H, W)."""
    B = predict.shape[0]
    Bs = source.shape[0]
    assert Bs in (1, B), "source batch must be 1 or match predict batch"
    assert predict.shape[1:] == source.shape[1:]
    orig_shape = predict.shape
    N = 1
    for d in predict.shape[1:]:
        N *= d

    p_flat = predict.reshape(B, N)
    s_flat = source.reshape(Bs, N)

    # Copy-free path when the flat size is a multiple of 8 sublanes and at
    # least one (8, 128) row; otherwise pad (tiny / odd sizes only).
    n_work = N
    if (N % _SUBLANES != 0) or (N < _SUBLANES * _LANES):
        n_work = max(_SUBLANES * _LANES, -(-N // _SUBLANES) * _SUBLANES)
        # TODO(synk): fold the <8-element tail in-kernel instead of padding.
        p_flat = jnp.pad(p_flat, ((0, 0), (0, n_work - N)))
        s_flat = jnp.pad(s_flat, ((0, 0), (0, n_work - N)),
                         constant_values=1)

    M = n_work // _SUBLANES
    p3 = p_flat.reshape(B, _SUBLANES, M)
    s3 = s_flat.reshape(Bs, _SUBLANES, M)

    lane_tile = min(_MAX_LANE_TILE, (M // _LANES) * _LANES)
    chunk = 256 if lane_tile % 256 == 0 else _LANES
    nt = -(-M // lane_tile)                     # lane tiles along M (ceil)

    tile_block = (pl.Squeezed(), _SUBLANES, lane_tile)
    part_block = (pl.Squeezed(), _SUBLANES, _LANES)

    shared = (Bs == 1) and (B > 1)

    if shared:
        # Tile axis outer so the shared source block index depends only on
        # the tile -> fetched once per tile instead of B times.
        mask_tail = (nt * lane_tile != M)
        kernel = functools.partial(
            _reduce_shared_kernel, lane_tile=lane_tile, chunk=chunk,
            m_total=M, mask_tail=mask_tail)
        grid = (nt, B)
        p_map = lambda t, b: (b, 0, t)
        s_map = lambda t, b: (0, 0, t)
        o_map = lambda t, b: (b, 0, 0)
        n_parts = B
        scratch = [pltpu.VMEM((B, _SUBLANES, _LANES), jnp.float32),
                   pltpu.VMEM((B, _SUBLANES, _LANES), jnp.float32)]
        # Kept fully "arbitrary" for portability (a trailing parallel axis is
        # not guaranteed to be honored for megacore splitting); the source
        # dedup is a guaranteed win on all chips.
        sem = ("arbitrary", "arbitrary")
    else:
        # Per-batch source (Bs == B here).  For B == 1, split the tile range
        # 2-way across a leading parallel axis so both v7x cores contribute.
        n_split = 2 if (B == 1 and nt >= 2) else 1
        nt_split = -(-nt // n_split)
        mask_tail = (n_split * nt_split * lane_tile != M)
        kernel = functools.partial(
            _reduce_resident_kernel, lane_tile=lane_tile, chunk=chunk,
            m_total=M, n_split=n_split, nt_split=nt_split,
            mask_tail=mask_tail)
        grid = (B * n_split, nt_split)
        if n_split == 1:
            p_map = lambda v, t: (v, 0, t)
        else:
            # Clamp overshoot block indices into range (the re-read data is
            # masked out in-kernel via the unclamped column index).
            p_map = lambda v, t: (v // n_split, 0,
                                  jnp.minimum((v % n_split) * nt_split + t,
                                              nt - 1))
        s_map = p_map
        o_map = lambda v, t: (v, 0, 0)
        n_parts = B * n_split
        scratch = []
        sem = ("parallel", "arbitrary")

    part_shape = jax.ShapeDtypeStruct((n_parts, _SUBLANES, _LANES),
                                      jnp.float32)

    num_part, den_part = pl.pallas_call(
        kernel,
        out_shape=(part_shape, part_shape),
        grid=grid,
        in_specs=[
            pl.BlockSpec(tile_block, p_map),
            pl.BlockSpec(tile_block, s_map),
        ],
        out_specs=(
            pl.BlockSpec(part_block, o_map),
            pl.BlockSpec(part_block, o_map),
        ),
        scratch_shapes=scratch,
        compiler_params=pltpu.CompilerParams(dimension_semantics=sem),
    )(p3, s3)

    # Tiny reduction of the (.., 8, 128) partials + the per-batch scale is
    # done once here (hoisted out of the phase-2 inner loop).
    num = jnp.sum(num_part.reshape(B, -1), axis=1)
    den = jnp.sum(den_part.reshape(B, -1), axis=1) + 1e-10
    scale = (num / den).astype(jnp.float32)      # (B,), fed via SMEM

    out3 = pl.pallas_call(
        _scale_kernel,
        out_shape=jax.ShapeDtypeStruct((B, _SUBLANES, M), predict.dtype),
        grid=(B, nt),
        in_specs=[
            pl.BlockSpec(memory_space=pltpu.MemorySpace.SMEM),
            pl.BlockSpec(tile_block, lambda b, t: (b, 0, t)),
        ],
        out_specs=pl.BlockSpec(tile_block, lambda b, t: (b, 0, t)),
        compiler_params=pltpu.CompilerParams(
            dimension_semantics=("parallel", "parallel")),
    )(scale, p3)

    out_flat = out3.reshape(B, n_work)
    if n_work != N:
        out_flat = out_flat[:, :N]
    return out_flat.reshape(orig_shape)


def _reference(predict, source):
    # Pure-JAX reference for a sanity check.
    p = jnp.clip(predict, 0.0, 1.0)
    s = jnp.broadcast_to(source, predict.shape)
    m = (s != 1.0).astype(jnp.float32)
    num = jnp.sum(p * s * m, axis=(1, 2, 3), keepdims=True)
    den = jnp.sum(p * p * m, axis=(1, 2, 3), keepdims=True) + 1e-10
    return (num / den) * p


if __name__ == "__main__":
    key = jax.random.PRNGKey(0)
    k1, k2 = jax.random.split(key)

    # 1) Per-batch source, flat size a multiple of 8*128 (copy-free path).
    B, C, H, W = 2, 4, 16, 16
    predict = jax.random.uniform(k1, (B, C, H, W), jnp.float32, -0.2, 1.2)
    source = jax.random.uniform(k2, (B, C, H, W), jnp.float32, 0.0, 1.0)
    # Sprinkle exact 1.0 values into source so the (source != 1) mask matters.
    source = source.at[:, :, ::4, ::4].set(1.0)

    out = jax.block_until_ready(eld_illuminance_correct(predict, source))
    ref = _reference(predict, source)
    assert out.shape == predict.shape and out.dtype == predict.dtype
    assert jnp.allclose(out, ref, atol=1e-5, rtol=1e-4)

    # 2) Shared-source path (source batch == 1, predict batch > 1).
    out_shared = jax.block_until_ready(
        eld_illuminance_correct(predict, source[:1]))
    ref_shared = _reference(predict, source[:1])
    assert jnp.allclose(out_shared, ref_shared, atol=1e-5, rtol=1e-4)

    # 3) Odd size (exercises the small padding fallback).
    p2 = jax.random.uniform(k1, (2, 3, 10, 11), jnp.float32, -0.2, 1.2)
    s2 = jax.random.uniform(k2, (2, 3, 10, 11), jnp.float32, 0.0, 1.0)
    s2 = s2.at[:, :, ::3, ::3].set(1.0)
    out2 = jax.block_until_ready(eld_illuminance_correct(p2, s2))
    assert jnp.allclose(out2, _reference(p2, s2), atol=1e-5, rtol=1e-4)

    # 4) B == 1, larger image: multi-tile, core-split reduction, tail mask.
    p4 = jax.random.uniform(k1, (1, 3, 512, 512), jnp.float32, -0.2, 1.2)
    s4 = jax.random.uniform(k2, (1, 3, 512, 512), jnp.float32, 0.0, 1.0)
    s4 = s4.at[:, :, ::5, ::5].set(1.0)
    out4 = jax.block_until_ready(eld_illuminance_correct(p4, s4))
    assert jnp.allclose(out4, _reference(p4, s4), atol=1e-5, rtol=1e-4)

    print("KERNEL_OK")
</pallas_src>

<mosaic_0001>
module attributes {stable_mosaic.version = 11 : i64} {
  func.func @_reduce_resident_kernel(%arg0: i32, %arg1: i32, %arg2: memref<1x8x128xf32, #tpu.memory_space<vmem>>, %arg3: memref<1x8x128xf32, #tpu.memory_space<vmem>>, %arg4: memref<1x8x128xf32, #tpu.memory_space<vmem>>, %arg5: memref<1x8x128xf32, #tpu.memory_space<vmem>>) attributes {dimension_semantics = [#tpu.dimension_semantics<parallel>, #tpu.dimension_semantics<arbitrary>], iteration_bounds = array<i64: 2, 1>, scalar_prefetch = 0 : i64, scratch_operands = 0 : i64, tpu.core_type = #tpu.core_type<tc>, window_params = [{transform_indices = @transform_0, window_bounds = array<i64: 1, 8, 128>}, {transform_indices = @transform_1, window_bounds = array<i64: 1, 8, 128>}, {transform_indices = @transform_2, window_bounds = array<i64: 1, 8, 128>}, {transform_indices = @transform_3, window_bounds = array<i64: 1, 8, 128>}]} {
    %cst = arith.constant 0.000000e+00 : f32
    %0 = vector.broadcast %cst : f32 to vector<8x128xf32>
    %cst_0 = arith.constant 0.000000e+00 : f32
    %1 = vector.broadcast %cst_0 : f32 to vector<8x128xf32>
    %c0 = arith.constant 0 : index
    %c0_1 = arith.constant 0 : index
    %c0_2 = arith.constant 0 : index
    %2 = vector.load %arg3[%c0, %c0_1, %c0_2] : memref<1x8x128xf32, #tpu.memory_space<vmem>>, vector<1x8x128xf32>
    %3 = vector.shape_cast %2 : vector<1x8x128xf32> to vector<8x128xf32>
    %c0_3 = arith.constant 0 : index
    %c0_4 = arith.constant 0 : index
    %c0_5 = arith.constant 0 : index
    %4 = vector.load %arg2[%c0_3, %c0_4, %c0_5] : memref<1x8x128xf32, #tpu.memory_space<vmem>>, vector<1x8x128xf32>
    %5 = vector.shape_cast %4 : vector<1x8x128xf32> to vector<8x128xf32>
    %cst_6 = arith.constant 0.000000e+00 : f32
    %cst_7 = arith.constant 1.000000e+00 : f32
    %6 = vector.broadcast %cst_6 : f32 to vector<8x128xf32>
    %7 = arith.maximumf %6, %5 : vector<8x128xf32>
    %8 = vector.broadcast %cst_7 : f32 to vector<8x128xf32>
    %9 = arith.minimumf %8, %7 : vector<8x128xf32>
    %cst_8 = arith.constant 1.000000e+00 : f32
    %10 = vector.broadcast %cst_8 : f32 to vector<8x128xf32>
    %11 = arith.cmpf one, %3, %10 : vector<8x128xf32>
    %12 = arith.mulf %9, %3 : vector<8x128xf32>
    %cst_9 = arith.constant 0.000000e+00 : f32
    %13 = vector.broadcast %cst_9 : f32 to vector<8x128xf32>
    %14 = arith.select %11, %12, %13 : vector<8x128xi1>, vector<8x128xf32>
    %15 = arith.addf %0, %14 : vector<8x128xf32>
    %16 = arith.mulf %9, %9 : vector<8x128xf32>
    %cst_10 = arith.constant 0.000000e+00 : f32
    %17 = vector.broadcast %cst_10 : f32 to vector<8x128xf32>
    %18 = arith.select %11, %16, %17 : vector<8x128xi1>, vector<8x128xf32>
    %19 = arith.addf %1, %18 : vector<8x128xf32>
    %c0_i32 = arith.constant 0 : i32
    %20 = arith.cmpi eq, %arg1, %c0_i32 : i32
    %21 = arith.extui %20 : i1 to i32
    %c0_i32_11 = arith.constant 0 : i32
    %22 = arith.cmpi ne, %21, %c0_i32_11 : i32
    scf.if %22 {
      %c0_14 = arith.constant 0 : index
      %c0_15 = arith.constant 0 : index
      %c0_16 = arith.constant 0 : index
      %26 = vector.load %arg4[%c0_14, %c0_15, %c0_16] : memref<1x8x128xf32, #tpu.memory_space<vmem>>, vector<1x8x128xf32>
      %27 = vector.shape_cast %26 : vector<1x8x128xf32> to vector<8x128xf32>
      %28 = vector.shape_cast %15 : vector<8x128xf32> to vector<1x8x128xf32>
      tpu.vector_store %arg4[%c0_14, %c0_15, %c0_16], %28 {strides = array<i32>} : memref<1x8x128xf32, #tpu.memory_space<vmem>>, vector<1x8x128xf32>,
      %c0_17 = arith.constant 0 : index
      %c0_18 = arith.constant 0 : index
      %c0_19 = arith.constant 0 : index
      %29 = vector.load %arg5[%c0_17, %c0_18, %c0_19] : memref<1x8x128xf32, #tpu.memory_space<vmem>>, vector<1x8x128xf32>
      %30 = vector.shape_cast %29 : vector<1x8x128xf32> to vector<8x128xf32>
      %31 = vector.shape_cast %19 : vector<8x128xf32> to vector<1x8x128xf32>
      tpu.vector_store %arg5[%c0_17, %c0_18, %c0_19], %31 {strides = array<i32>} : memref<1x8x128xf32, #tpu.memory_space<vmem>>, vector<1x8x128xf32>,
    } else {
    }
    %c0_i32_12 = arith.constant 0 : i32
    %23 = arith.cmpi sgt, %arg1, %c0_i32_12 : i32
    %24 = arith.extui %23 : i1 to i32
    %c0_i32_13 = arith.constant 0 : i32
    %25 = arith.cmpi ne, %24, %c0_i32_13 : i32
    scf.if %25 {
      %c0_14 = arith.constant 0 : index
      %c0_15 = arith.constant 0 : index
      %c0_16 = arith.constant 0 : index
      %26 = vector.load %arg4[%c0_14, %c0_15, %c0_16] : memref<1x8x128xf32, #tpu.memory_space<vmem>>, vector<1x8x128xf32>
      %27 = vector.shape_cast %26 : vector<1x8x128xf32> to vector<8x128xf32>
      %28 = arith.addf %27, %15 : vector<8x128xf32>
      %c0_17 = arith.constant 0 : index
      %c0_18 = arith.constant 0 : index
      %c0_19 = arith.constant 0 : index
      %29 = vector.load %arg4[%c0_17, %c0_18, %c0_19] : memref<1x8x128xf32, #tpu.memory_space<vmem>>, vector<1x8x128xf32>
      %30 = vector.shape_cast %29 : vector<1x8x128xf32> to vector<8x128xf32>
      %31 = vector.shape_cast %28 : vector<8x128xf32> to vector<1x8x128xf32>
      tpu.vector_store %arg4[%c0_17, %c0_18, %c0_19], %31 {strides = array<i32>} : memref<1x8x128xf32, #tpu.memory_space<vmem>>, vector<1x8x128xf32>,
      %c0_20 = arith.constant 0 : index
      %c0_21 = arith.constant 0 : index
      %c0_22 = arith.constant 0 : index
      %32 = vector.load %arg5[%c0_20, %c0_21, %c0_22] : memref<1x8x128xf32, #tpu.memory_space<vmem>>, vector<1x8x128xf32>
      %33 = vector.shape_cast %32 : vector<1x8x128xf32> to vector<8x128xf32>
      %34 = arith.addf %33, %19 : vector<8x128xf32>
      %c0_23 = arith.constant 0 : index
      %c0_24 = arith.constant 0 : index
      %c0_25 = arith.constant 0 : index
      %35 = vector.load %arg5[%c0_23, %c0_24, %c0_25] : memref<1x8x128xf32, #tpu.memory_space<vmem>>, vector<1x8x128xf32>
      %36 = vector.shape_cast %35 : vector<1x8x128xf32> to vector<8x128xf32>
      %37 = vector.shape_cast %34 : vector<8x128xf32> to vector<1x8x128xf32>
      tpu.vector_store %arg5[%c0_23, %c0_24, %c0_25], %37 {strides = array<i32>} : memref<1x8x128xf32, #tpu.memory_space<vmem>>, vector<1x8x128xf32>,
    } else {
    }
    return
  }
  func.func @transform_0(%arg0: i32, %arg1: i32) -> (i32, i32, i32) {
    %c0_i32 = arith.constant 0 : i32
    %c0_i32_0 = arith.constant 0 : i32
    return %arg0, %c0_i32, %arg1 : i32, i32, i32
  }
  func.func @transform_1(%arg0: i32, %arg1: i32) -> (i32, i32, i32) {
    %c0_i32 = arith.constant 0 : i32
    %c0_i32_0 = arith.constant 0 : i32
    return %arg0, %c0_i32, %arg1 : i32, i32, i32
  }
  func.func @transform_2(%arg0: i32, %arg1: i32) -> (i32, i32, i32) {
    %c0_i32 = arith.constant 0 : i32
    %c0_i32_0 = arith.constant 0 : i32
    %c0_i32_1 = arith.constant 0 : i32
    return %arg0, %c0_i32, %c0_i32_0 : i32, i32, i32
  }
  func.func @transform_3(%arg0: i32, %arg1: i32) -> (i32, i32, i32) {
    %c0_i32 = arith.constant 0 : i32
    %c0_i32_0 = arith.constant 0 : i32
    %c0_i32_1 = arith.constant 0 : i32
    return %arg0, %c0_i32, %c0_i32_0 : i32, i32, i32
  }
}

</mosaic_0001>

<bundles_post_ra>
// kernel: tpu_custom_call.1
= control target key start
LH: loop header
LB: loop body
LE: loop exit
PB: predicated region body
PF: predicated region fallthrough
CT: control target
= control target key end

     0   :  { %9 = vsyncpa [#allocation3], 0  ;;  %s990_s0 = inlined_call_operand.hbm [shape: f32[2,8,128], index: 0, kind: input, shape index: {}]   ;;  %s991_s1 = inlined_call_operand.hbm [shape: f32[2,8,128], index: 1, kind: input, shape index: {}]   ;;  %s992_s2 = inlined_call_operand.hbm [shape: f32[2,8,128], index: 2, kind: output, shape index: {0}]   ;;  %s993_s3 = inlined_call_operand.hbm [shape: f32[2,8,128], index: 3, kind: output, shape index: {1}]  }
   0x1   :  { %11 = vsyncpa [#allocation3 + $0x1], 0 }
   0x2   :  { %12 = vsyncpa [#allocation6], 0 }
   0x3   :  { %14 = vsyncpa [#allocation6 + $0x1], 0 }
   0x4   :  { %15 = vsyncpa [#allocation4], 0 }
   0x5   :  { %17 = vsyncpa [#allocation4 + $0x1], 0 }
   0x6   :  { %18 = vsyncpa [#allocation9], 0 }
   0x7   :  { %20 = vsyncpa [#allocation9 + $0x1], 0  ;;  %s741_s12 = smov 0   ;;  %s743_s13 = smov 0  }
   0x8   :  { %s745_s14 = smov 0   ;;  %s747_s15 = smov 0  }
   0x9   :  { %s749_s16 = smov 0   ;;  %s751_s17 = smov 0  }
   0xa LB: > { %s446_s18 = sadd.s32 4294967295, %s715_s17   ;;  %s447_s19 = sadd.s32 4294967294, %s715_s17   ;;  %s715_s17 = sphi %s751_s17, %s26_s17   ;;  %s711_s16 = sphi %s749_s16, %s1013_s16   ;;  %s707_s15 = sphi %s747_s15, %s1012_s15   ;;  %s703_s14 = sphi %s745_s14, %s1011_s14   ;;  %s699_s13 = sphi %s743_s13, %s1010_s13   ;;  %s695_s12 = sphi %s741_s12, %s1009_s12  }
   0xb   : > { %s38_s20 = sadd.s32 1, %s711_s16  ;;  %s47_s21 = sadd.s32 1, %s703_s14 }
   0xc   : > { %p40_p0 = scmp.ge.s32.totalorder %s38_s20, 2  ;;  %p54_p1 = scmp.ne.s32.totalorder %s703_s14, %s699_s13 }
   0xd   : > { %p55_p2 = scmp.eq.s32.totalorder %s715_s17, 0  ;;  %p60_p3 = scmp.ne.s32.totalorder %s699_s13, %s695_s12 }
   0xe   : > { %s1015_s20 = smov (%p40_p0, %s38_s20), 0  ;;  %p61_p5 = scmp.eq.s32.totalorder %s446_s18, 0 }
   0xf   : > { %p782_p4 = por %p55_p2, %p54_p1  ;;  %s42_s23 = ssub.s32 %s711_s16, %s1015_s20 }
  0x10   : > { %p112_p6 = scmp.eq.s32.totalorder %s446_s18, 1  ;;  %p45_p7 = scmp.eq.s32.totalorder %s42_s23, 0 }
  0x11   : > { %p788_p8 = por %p61_p5, %p60_p3  ;;  %p118_p10 = scmp.eq.s32.totalorder %s447_s19, 1 }
  0x12   : > { %p792_p9 = por %p112_p6, %p54_p1  ;;  %p487_p13 = scmp.lt.s32.totalorder %s715_s17, 2 }
  0x13   : > { %s997_s24 = scalar_select %p788_p8, 1, 0 }
  0x14   : > { %s998_s25 = scalar_select %p792_p9, 1, 0 }
  0x15   : > { %s797_s26 = scalar_select %p45_p7, %s703_s14, %s47_s21  }
  0x16   : > { %p799_p11 = por %p118_p10, %p60_p3  ;;  %s806_s28 = sand.u32 1, %s703_s14  }
  0x17   : > { %s450_s29 = sshll.u32 %s806_s28, 3  ;;  %s451_s30 = sshll.u32 %s711_s16, 7 }
  0x18   : > { %s999_s27 = scalar_select %p799_p11, 1, 0 }
  0x19   : > { %s815_s6 = scalar_lea.hbm %s990_s0, %s451_s30  ;;  %s168_s7 = scalar_lea.vmem [#allocation2], %s450_s29 }
  0x1a   : > { %s176_s8 = sshll.u32 %s168_s7, 4  ;;  %p823_p0 = pnand %p487_p13, %p782_p4  ;;  %s819_s8 = int_to_ptr.vmem [resolvable:$true] %s176_s8 }
  0x1b   : > { %s165_s10 = scalar_lea.sflag [#allocation3], %s806_s28  ;;  %s537_s11 = scalar_lea.hbm %s815_s6, 128 }
  0x1c   : > { %p538_p3 = scmp.ne.s32.totalorder %s815_s6, %s537_s11  ;;  %p539_p5 = pneg %p823_p0 }
  0x1d   : > { %s542_s21 = scalar_lea.hbm %s990_s0, 256  ;;  %p543_p4 = scmp.lt.u32.totalorder %s815_s6, %s990_s0 }
  0x1e   : > { %p540_p6 = pnand %p539_p5, %p538_p3  ;;  %p544_p10 = scmp.lt.u32.totalorder %s542_s21, %s537_s11 }
  0x1f   : > { %p546_p12 = scmp.lt.u32.totalorder %s537_s11, %s815_s6 }
  0x20   : > { %p541_p7 = pneg %p540_p6  ;;  %p545_p13 = por %p544_p10, %p543_p4 }
  0x22   : > { %p547_p1 = por %p546_p12, %p545_p13 }
  0x24   : > { %p548_p2 = pnand %p547_p1, %p541_p7 }
  0x26   : > { %551 = shalt.err (!%p548_p2)
}
  0x27   : > { %s552_s4 = scalar_lea.vmem %s819_s8, 128  ;;  %s717_s5 = smov [#allocation2]  }
  0x28   : > { %p553_p3 = scmp.ne.s32.totalorder %s819_s8, %s552_s4  ;;  %s557_s7 = sshll.u32 %s717_s5, 4  ;;  %s558_s7 = int_to_ptr.vmem [resolvable:$false] %s557_s7 }
  0x29   : > { %s559_s18 = scalar_lea.vmem %s558_s7, 256  ;;  %p560_p9 = scmp.lt.s32.totalorder %s819_s8, %s558_s7 }
  0x2a   : > { %p555_p6 = pnand %p553_p3, %p539_p5  ;;  %p561_p4 = scmp.lt.s32.totalorder %s559_s18, %s552_s4 }
  0x2c   : > { %p556_p11 = pneg %p555_p6  ;;  %p562_p10 = por %p561_p4, %p560_p9 }
  0x2e   : > { %p563_p12 = pnand %p562_p10, %p556_p11 }
  0x30   : > { %566 = shalt.err (!%p563_p12)
}
  0x31   : > { %476 = dma.hbm_to_vmem [thread:$0]  (!%p823_p0), %s815_s6, 128, %s819_s8, %s165_s10  }
  0x32   : > { %p1001_p1 = scmp.lt.s32.totalorder %s715_s17, 3  ;;  %p1002_p2 = scmp.ge.s32.totalorder %s715_s17, 1 }
  0x33   : > { %s868_s22 = scalar_lea.hbm %s991_s1, %s451_s30  ;;  %s187_s23 = scalar_lea.vmem [#allocation5], %s450_s29 }
  0x34   : > { %p859_p7 = pnand %p1002_p2, %p1001_p1  ;;  %s195_s4 = sshll.u32 %s187_s23, 4  ;;  %s196_s4 = int_to_ptr.vmem [resolvable:$true] %s195_s4 }
  0x35   : > { %s184_s6 = scalar_lea.sflag [#allocation6], %s806_s28  ;;  %s567_s8 = scalar_lea.hbm %s868_s22, 128 }
  0x36   : > { %s1003_s11 = scalar_select %p859_p7, 1, 0 }
  0x37   : > { %p568_p9 = scmp.ne.s32.totalorder %s868_s22, %s567_s8  ;;  %s572_s30 = scalar_lea.hbm %s991_s1, 256 }
  0x38   : > { %p573_p3 = scmp.lt.u32.totalorder %s868_s22, %s991_s1  ;;  %p574_p6 = scmp.lt.u32.totalorder %s572_s30, %s567_s8 }
  0x39   : > { %p570_p11 = pnand %p568_p9, %p539_p5  ;;  %p576_p10 = scmp.lt.u32.totalorder %s567_s8, %s868_s22 }
  0x3a   : > { %p575_p4 = por %p574_p6, %p573_p3 }
  0x3b   : > { %p571_p13 = pneg %p570_p11 }
  0x3c   : > { %p577_p12 = por %p576_p10, %p575_p4 }
  0x3e   : > { %p578_p1 = pnand %p577_p12, %p571_p13 }
  0x40   : > { %581 = shalt.err (!%p578_p1)
}
  0x41   : > { %s582_s28 = scalar_lea.vmem %s196_s4, 128  ;;  %s718_s29 = smov [#allocation5]  }
  0x42   : > { %p583_p2 = scmp.ne.s32.totalorder %s196_s4, %s582_s28  ;;  %s587_s19 = sshll.u32 %s718_s29, 4  ;;  %s588_s19 = int_to_ptr.vmem [resolvable:$false] %s587_s19 }
  0x43   : > { %s589_s21 = scalar_lea.vmem %s588_s19, 256  ;;  %p590_p8 = scmp.lt.s32.totalorder %s196_s4, %s588_s19 }
  0x44   : > { %p585_p9 = pnand %p583_p2, %p539_p5  ;;  %p591_p7 = scmp.lt.s32.totalorder %s589_s21, %s582_s28 }
  0x46   : > { %p586_p11 = pneg %p585_p9  ;;  %p592_p3 = por %p591_p7, %p590_p8 }
  0x48   : > { %p593_p6 = pnand %p592_p3, %p586_p11 }
  0x4a   : > { %596 = shalt.err (!%p593_p6)
}
  0x4b   : > { %479 = dma.hbm_to_vmem [thread:$0]  (!%p823_p0), %s868_s22, 128, %s196_s4, %s184_s6  }
  0x4c   : > { %p1004_p13 = scmp.ne.s32.totalorder %s1003_s11, 0 }
  0x4d   : > { %s895_s23 = sand.u32 (!%p1004_p13), 1, %s699_s13   ;;  %p1005_p5 = scmp.ne.s32.totalorder (!%p1004_p13), %s997_s24, 0 }
  0x4e   : > { %204 = sbr.rel (%p1004_p13) target bundleno = 138 (0x8a), region = 28  ;;  %s455_s8 = sshll.u32 (!%p1004_p13), %s895_s23, 3 }
  0x4f   : > { %s207_s10 = scalar_lea.sflag (!%p1004_p13), [#allocation3], %s895_s23  ;;  %s210_s5 = scalar_lea.vmem (!%p1004_p13), [#allocation2], %s455_s8 }
  0x55   : > { %678 = dma.done.wait (%p1005_p5), %s207_s10, 128  }
  0x56   : > { %680 = vsyncadd (%p1005_p5), %s207_s10, 4294967168  ;;  %s216_s9 = scalar_lea.sflag [#allocation6], %s895_s23  ;;  %s219_s22 = scalar_lea.vmem [#allocation5], %s455_s8 }
  0x57   : > { %682 = dma.done.wait (%p1005_p5), %s216_s9, 128  }
  0x58   : > { %684 = vsyncadd (%p1005_p5), %s216_s9, 4294967168  ;;  %v253_v0 = vld [vmem:[%s210_s5] sm:$0xff]  ;;  %v252_v1 = vld [vmem:[%s219_s22] sm:$0xff]  ;;  %s244_s11 = scalar_lea.vmem [#allocation7], %s455_s8  ;;  %s251_s6 = scalar_lea.vmem [#allocation8], %s455_s8 }
  0x59   : > { %v254_v2 = vmax.f32 %v253_v0, 0.0  ;;  %s298_s4 = sshll.u32 %s244_s11, 4  ;;  %s311_s30 = sshll.u32 %s251_s6, 4  ;;  %vm256_vm0 = vcmp.ne.f32.partialorder %v252_v1, 1.0  ;;  %s909_s4 = int_to_ptr.vmem [resolvable:$true] %s298_s4  ;;  %s911_s30 = int_to_ptr.vmem [resolvable:$true] %s311_s30 }
  0x5a   : > { %s461_s7 = sshll.u32 %s707_s15, 7  ;;  %s280_s21 = scalar_lea.sflag [#allocation4], %s895_s23 }
  0x5b   : > { %v255_v3 = vmin.f32 %v254_v2, 1.0  ;;  %s916_s28 = scalar_lea.hbm %s992_s2, %s461_s7  ;;  %s921_s15 = scalar_lea.hbm %s993_s3, %s461_s7 }
  0x5c   : > { %s597_s8 = scalar_lea.vmem %s909_s4, 128  ;;  %p1006_p0 = scmp.ne.s32.totalorder %s998_s25, 0 }
  0x5d   : > { %v257_v4 = vmul.f32 %v255_v3, %v252_v1  ;;  %v260_v5 = vmul.f32 %v255_v3, %v255_v3  ;;  %p598_p8 = scmp.ne.s32.totalorder %s909_s4, %s597_s8  ;;  %s719_s10 = smov [#allocation7]  }
  0x5e   : > { %s601_s5 = sshll.u32 %s719_s10, 4  ;;  %s602_s5 = int_to_ptr.vmem [resolvable:$false] %s601_s5 }
  0x5f   : > { %v258_v6 = vsel %vm256_vm0, %v257_v4, 0.0  ;;  %v261_v7 = vsel %vm256_vm0, %v260_v5, 0.0  ;;  %p599_p7 = pnand %p598_p8, %p1006_p0  ;;  %s603_s9 = scalar_lea.vmem %s602_s5, 256 }
  0x60   : > { %267 = vst [vmem:[%s244_s11] sm:$0xff] %v258_v6  ;;  %268 = vst [vmem:[%s251_s6] sm:$0xff] %v261_v7  ;;  %p604_p10 = scmp.lt.s32.totalorder %s909_s4, %s602_s5  ;;  %p605_p12 = scmp.lt.s32.totalorder %s603_s9, %s597_s8 }
  0x61   : > { %p600_p4 = pneg %p599_p7 }
  0x62   : > { %p606_p1 = por %p605_p12, %p604_p10 }
  0x64   : > { %p607_p2 = pnand %p606_p1, %p600_p4 }
  0x66   : > { %610 = shalt.err (!%p607_p2)
}
  0x67   : > { %s611_s22 = scalar_lea.hbm %s916_s28, 128  ;;  %s615_s7 = scalar_lea.hbm %s992_s2, 256 }
  0x68   : > { %p612_p9 = scmp.ne.s32.totalorder %s916_s28, %s611_s22  ;;  %p616_p6 = scmp.lt.u32.totalorder %s916_s28, %s992_s2 }
  0x69   : > { %p617_p13 = scmp.lt.u32.totalorder %s615_s7, %s611_s22  ;;  %p619_p8 = scmp.lt.u32.totalorder %s611_s22, %s916_s28 }
  0x6a   : > { %p613_p11 = pnand %p612_p9, %p1006_p0 }
  0x6b   : > { %p618_p5 = por %p617_p13, %p616_p6 }
  0x6c   : > { %p614_p3 = pneg %p613_p11 }
  0x6d   : > { %p620_p7 = por %p619_p8, %p618_p5 }
  0x6f   : > { %p621_p4 = pnand %p620_p7, %p614_p3 }
  0x71   : > { %624 = shalt.err (!%p621_p4)
}
  0x72   : > { %469 = dma.vmem_to_hbm [thread:$0]  (%p1006_p0), %s909_s4, 128, %s916_s28, %s280_s21  }
  0x73   : > { %s285_s29 = scalar_lea.sflag [#allocation9], %s895_s23  ;;  %s625_s19 = scalar_lea.vmem %s911_s30, 128 }
  0x74   : > { %p626_p10 = scmp.ne.s32.totalorder %s911_s30, %s625_s19  ;;  %s720_s8 = smov [#allocation8]  }
  0x75   : > { %s629_s10 = sshll.u32 %s720_s8, 4  ;;  %s630_s10 = int_to_ptr.vmem [resolvable:$false] %s629_s10 }
  0x76   : > { %p627_p12 = pnand %p626_p10, %p1006_p0  ;;  %s631_s5 = scalar_lea.vmem %s630_s10, 256 }
  0x77   : > { %p632_p2 = scmp.lt.s32.totalorder %s911_s30, %s630_s10  ;;  %p633_p9 = scmp.lt.s32.totalorder %s631_s5, %s625_s19 }
  0x78   : > { %p628_p1 = pneg %p627_p12 }
  0x79   : > { %p634_p11 = por %p633_p9, %p632_p2 }
  0x7b   : > { %p635_p3 = pnand %p634_p11, %p628_p1 }
  0x7d   : > { %638 = shalt.err (!%p635_p3)
}
  0x7e   : > { %s639_s23 = scalar_lea.hbm %s921_s15, 128  ;;  %s643_s21 = scalar_lea.hbm %s993_s3, 256 }
  0x7f   : > { %p640_p6 = scmp.ne.s32.totalorder %s921_s15, %s639_s23  ;;  %p644_p8 = scmp.lt.u32.totalorder %s921_s15, %s993_s3 }
  0x80   : > { %p645_p7 = scmp.lt.u32.totalorder %s643_s21, %s639_s23  ;;  %p647_p10 = scmp.lt.u32.totalorder %s639_s23, %s921_s15 }
  0x81   : > { %p641_p13 = pnand %p640_p6, %p1006_p0 }
  0x82   : > { %p646_p4 = por %p645_p7, %p644_p8 }
  0x83   : > { %p642_p5 = pneg %p641_p13 }
  0x84   : > { %p648_p12 = por %p647_p10, %p646_p4 }
  0x86   : > { %p649_p1 = pnand %p648_p12, %p642_p5 }
  0x88   : > { %652 = shalt.err (!%p649_p1)
}
  0x89   : > { %470 = dma.vmem_to_hbm [thread:$0]  (%p1006_p0), %s911_s30, 128, %s921_s15, %s285_s29  }
  0x8a PF: > { %s323_s11 = sand.u32 1, %s695_s12   ;;  %p1007_p2 = scmp.ne.s32.totalorder %s999_s27, 0 }
  0x8b   : > { %p1008_p9 = scmp.ge.s32.totalorder %s715_s17, 2  ;;  %s324_s6 = scalar_lea.sflag [#allocation4], %s323_s11 }
  0x8d   : > { %p481_p11 = pnand %p1008_p9, %p1007_p2 }
  0x8f   : > { %686 = dma.done.wait (!%p481_p11), %s324_s6, 128  }
  0x90   : > { %688 = vsyncadd (!%p481_p11), %s324_s6, 4294967168  ;;  %s333_s7 = scalar_lea.sflag [#allocation9], %s323_s11 }
  0x91   : > { %690 = dma.done.wait (!%p481_p11), %s333_s7, 128  }
  0x92   : > { %692 = vsyncadd (!%p481_p11), %s333_s7, 4294967168  ;;  %s26_s17 = sadd.s32 1, %s715_s17   ;;  %s1009_s12 = smov %s699_s13 }
  0x93   : > { %p23_p3 = scmp.ge.s32.totalorder %s26_s17, 4   ;;  %s1010_s13 = smov %s703_s14 }
  0x94   : > { %s1011_s14 = smov %s797_s26  ;;  %s1012_s15 = smov %s711_s16 }
  0x95   : > { %s1013_s16 = smov %s1015_s20  ;;  %25 = sbr.rel (!%p23_p3) target bundleno = 10 (0xa), region = 111 }
  0x9c   :  { %338 = vsyncpa [#allocation3], 1 }
  0x9d   :  { %340 = vsyncpa [#allocation3 + $0x1], 1 }
  0x9e   :  { %341 = vsyncpa [#allocation6], 1 }
  0x9f   :  { %343 = vsyncpa [#allocation6 + $0x1], 1 }
  0xa0   :  { %344 = vsyncpa [#allocation4], 1 }
  0xa1   :  { %346 = vsyncpa [#allocation4 + $0x1], 1 }
  0xa2   :  { %347 = vsyncpa [#allocation9], 1 }
  0xa3   :  { %349 = vsyncpa [#allocation9 + $0x1], 1 }

</bundles_post_ra>
